<compile_context>
chip_gen: v5e
topology: v5e:2x2
jax: 0.10.0
libtpu: 0.0.40
codegen_flags: <defaults>
</compile_context>

<pallas_src>
import functools

import jax
import jax.numpy as jnp
from jax.experimental import pallas as pl
from jax.experimental.pallas import tpu as pltpu

LANES = 128
SUBLANES = 8
# 4096 * 128 f32 elements = 2 MiB per input per pipeline buffer;
# 2 inputs x 2 buffers = 8 MiB -> fits the 16 MiB default scoped VMEM on v5e.
MAX_TILE_ELEMS = 4096 * LANES


def _dicebce_sums_kernel(x_ref, t_ref, o_ref, acc_ref, *, act, h, w, tile_h, acc_rows):
    """Accumulates per-lane partial sums for one (batch, channel) slice.

    x_ref   : (tile_h, w) logits (probabilities if act=False), native dtype
    t_ref   : (tile_h, w) targets, native dtype
    o_ref   : (4, w) f32 -> per-lane [sum(p*t), sum(p), sum(t), sum(bce)]
    acc_ref : (4, acc_rows, w) f32 running accumulators (persist over the H-tile axis)
    """
    j = pl.program_id(2)

    @pl.when(j == 0)
    def _():
        acc_ref[...] = jnp.zeros_like(acc_ref)

    x = x_ref[...].astype(jnp.float32)
    t = t_ref[...].astype(jnp.float32)

    if act:
        # 3 EUP ops/element (softplus = exp+log1p, plus one exp); sigmoid derived
        # from softplus, never the BCE logs from sigmoid (f32 underflow hazard).
        sp = jax.nn.softplus(x)
        p = jnp.exp(x - sp)                              # == sigmoid(x)
        # torch BCE on probabilities clamps each log term at -100:
        #   -log(p) = softplus(x) - x ,  -log(1-p) = softplus(x)
        bce = t * jnp.minimum(sp - x, 100.0) + (1.0 - t) * jnp.minimum(sp, 100.0)
    else:
        p = x
        log_p = jnp.maximum(jnp.log(p), -100.0)
        log_1mp = jnp.maximum(jnp.log(1.0 - p), -100.0)
        bce = -(t * log_p + (1.0 - t) * log_1mp)

    if h % tile_h != 0:
        # Ragged last H-tile: OOB rows contain unspecified data -> select, not mul.
        rem = h - j * tile_h
        row = jax.lax.broadcasted_iota(jnp.int32, (tile_h, w), 0)
        keep = row < rem
        p = jnp.where(keep, p, 0.0)
        t = jnp.where(keep, t, 0.0)
        bce = jnp.where(keep, bce, 0.0)

    def part(v):  # (tile_h, w) -> (acc_rows, w) partial sums, pure VPU adds
        if acc_rows == 1:
            return jnp.sum(v, axis=0, keepdims=True)
        return jnp.sum(v.reshape(tile_h // acc_rows, acc_rows, w), axis=0)

    acc_ref[0] += part(p * t)
    acc_ref[1] += part(p)
    acc_ref[2] += part(t)
    acc_ref[3] += part(bce)

    @pl.when(j == pl.num_programs(2) - 1)
    def _():
        # One small cross-sublane reduce per (batch, channel); lanes stay unreduced
        # (the tiny final reduce happens in the wrapper).
        o_ref[...] = jnp.sum(acc_ref[...], axis=1)


def dice_b_loss(inputs, targets, *, weight=0.5, num_class=2, smooth=1.0, act=True):
    """JAX/Pallas equivalent of DiceBLoss.forward (NCHW inputs, any float dtype)."""
    del num_class  # shape is taken from `inputs`, matching the PyTorch forward
    n, c, h, w = inputs.shape
    n_elem = n * (c - 1) * h * w

    # H-tile: a multiple of 8 sublanes (ragged tail masked in-kernel), capped so one
    # f32 input tile stays <= MAX_TILE_ELEMS.
    max_th = max(SUBLANES, (MAX_TILE_ELEMS // max(w, 1)) // SUBLANES * SUBLANES)
    if h < SUBLANES:
        tile_h, acc_rows = h, 1                         # full-dim block
    else:
        tile_h, acc_rows = min(max_th, (h // SUBLANES) * SUBLANES), SUBLANES
    num_h_tiles = pl.cdiv(h, tile_h)

    partials = pl.pallas_call(
        functools.partial(_dicebce_sums_kernel, act=act, h=h, w=w,
                          tile_h=tile_h, acc_rows=acc_rows),
        out_shape=jax.ShapeDtypeStruct((n, c - 1, 4, w), jnp.float32),
        grid=(n, c - 1, num_h_tiles),
        in_specs=[
            pl.BlockSpec((None, None, tile_h, w), lambda b, ch, j: (b, ch + 1, j, 0)),
            pl.BlockSpec((None, None, tile_h, w), lambda b, ch, j: (b, ch + 1, j, 0)),
        ],
        out_specs=pl.BlockSpec((None, None, 4, w), lambda b, ch, j: (b, ch, 0, 0)),
        scratch_shapes=[pltpu.VMEM((4, acc_rows, w), jnp.float32)],
        compiler_params=pltpu.CompilerParams(
            # batch/channel split across TensorCores on v7x; H-tile reduction last.
            dimension_semantics=("parallel", "parallel", "arbitrary"),
        ),
    )(inputs, targets)

    sums = jnp.sum(partials, axis=(0, 1, 3))            # tiny XLA reduce -> (4,)
    intersection, p_sum, t_sum, bce_sum = sums[0], sums[1], sums[2], sums[3]

    dice_loss = 1.0 - (2.0 * intersection + smooth) / (p_sum + t_sum + smooth)
    bce = bce_sum / jnp.float32(n_elem)                 # reduction='mean'
    return weight * bce + (1.0 - weight) * dice_loss


def _reference(inputs, targets, *, weight=0.5, smooth=1.0, act=True):
    """Pure-JAX reference mirroring the PyTorch forward, for sanity checking."""
    x = inputs.astype(jnp.float32)
    if act:
        x = jax.nn.sigmoid(x)
    pred = x[:, 1:, :, :].reshape(-1)
    true = targets.astype(jnp.float32)[:, 1:, :, :].reshape(-1)
    intersection = jnp.sum(pred * true)
    dice_loss = 1.0 - (2.0 * intersection + smooth) / (
        jnp.sum(pred) + jnp.sum(true) + smooth
    )
    log_p = jnp.maximum(jnp.log(pred), -100.0)
    log_1mp = jnp.maximum(jnp.log(1.0 - pred), -100.0)
    bce = jnp.mean(-(true * log_p + (1.0 - true) * log_1mp))
    return weight * bce + (1.0 - weight) * dice_loss


if __name__ == "__main__":
    key = jax.random.PRNGKey(0)
    k1, k2, k3, k4 = jax.random.split(key, 4)

    # Case 1: act=True on logits, num_class=2 -> 2 channels (module default).
    logits = jax.random.normal(k1, (2, 2, 16, 16), dtype=jnp.float32)
    labels = (jax.random.uniform(k2, (2, 2, 16, 16)) > 0.5).astype(jnp.float32)
    loss = jax.block_until_ready(
        dice_b_loss(logits, labels, weight=0.5, num_class=2, smooth=1.0, act=True))
    ref = _reference(logits, labels, weight=0.5, smooth=1.0, act=True)
    assert jnp.allclose(loss, ref, atol=1e-5, rtol=1e-5), (loss, ref)

    # Case 2: act=False on probabilities, 3 channels, ragged H=20 (exercises the
    # in-kernel jnp.where mask on the last H-tile).
    probs = jax.random.uniform(k3, (2, 3, 20, 16), minval=0.01, maxval=0.99)
    labels2 = (jax.random.uniform(k4, (2, 3, 20, 16)) > 0.5).astype(jnp.float32)
    loss2 = jax.block_until_ready(
        dice_b_loss(probs, labels2, weight=0.5, num_class=3, smooth=1.0, act=False))
    ref2 = _reference(probs, labels2, weight=0.5, smooth=1.0, act=False)
    assert jnp.allclose(loss2, ref2, atol=1e-5, rtol=1e-5), (loss2, ref2)

    print("KERNEL_OK")
</pallas_src>

<mosaic_0001>
module attributes {stable_mosaic.version = 11 : i64} {
  func.func @_dicebce_sums_kernel(%arg0: i32, %arg1: i32, %arg2: i32, %arg3: memref<1x1x16x16xf32, #tpu.memory_space<vmem>>, %arg4: memref<1x1x16x16xf32, #tpu.memory_space<vmem>>, %arg5: memref<1x1x4x16xf32, #tpu.memory_space<vmem>>, %arg6: memref<4x8x16xf32, #tpu.memory_space<vmem>>) attributes {dimension_semantics = [#tpu.dimension_semantics<parallel>, #tpu.dimension_semantics<parallel>, #tpu.dimension_semantics<arbitrary>], iteration_bounds = array<i64: 2, 1, 1>, scalar_prefetch = 0 : i64, scratch_operands = 1 : i64, tpu.core_type = #tpu.core_type<tc>, window_params = [{transform_indices = @transform_0, window_bounds = array<i64: 1, 1, 16, 16>}, {transform_indices = @transform_1, window_bounds = array<i64: 1, 1, 16, 16>}, {transform_indices = @transform_2, window_bounds = array<i64: 1, 1, 4, 16>}]} {
    %c0_i32 = arith.constant 0 : i32
    %0 = arith.cmpi eq, %arg2, %c0_i32 : i32
    %1 = arith.extui %0 : i1 to i32
    %c0_i32_0 = arith.constant 0 : i32
    %2 = arith.cmpi ne, %1, %c0_i32_0 : i32
    scf.if %2 {
      %cst_39 = arith.constant 0.000000e+00 : f32
      %69 = vector.broadcast %cst_39 : f32 to vector<4x8x16xf32>
      %c0_40 = arith.constant 0 : index
      %c0_41 = arith.constant 0 : index
      %c0_42 = arith.constant 0 : index
      %70 = vector.load %arg6[%c0_40, %c0_41, %c0_42] : memref<4x8x16xf32, #tpu.memory_space<vmem>>, vector<4x8x16xf32>
      tpu.vector_store %arg6[%c0_40, %c0_41, %c0_42], %69 {strides = array<i32>} : memref<4x8x16xf32, #tpu.memory_space<vmem>>, vector<4x8x16xf32>,
    } else {
    }
    %c0 = arith.constant 0 : index
    %c0_1 = arith.constant 0 : index
    %c0_2 = arith.constant 0 : index
    %c0_3 = arith.constant 0 : index
    %3 = vector.load %arg3[%c0, %c0_1, %c0_2, %c0_3] : memref<1x1x16x16xf32, #tpu.memory_space<vmem>>, vector<1x1x16x16xf32>
    %4 = vector.shape_cast %3 : vector<1x1x16x16xf32> to vector<16x16xf32>
    %c0_4 = arith.constant 0 : index
    %c0_5 = arith.constant 0 : index
    %c0_6 = arith.constant 0 : index
    %c0_7 = arith.constant 0 : index
    %5 = vector.load %arg4[%c0_4, %c0_5, %c0_6, %c0_7] : memref<1x1x16x16xf32, #tpu.memory_space<vmem>>, vector<1x1x16x16xf32>
    %6 = vector.shape_cast %5 : vector<1x1x16x16xf32> to vector<16x16xf32>
    %cst = arith.constant 0.000000e+00 : f32
    %7 = vector.broadcast %cst : f32 to vector<16x16xf32>
    %8 = arith.maximumf %4, %7 : vector<16x16xf32>
    %9 = vector.broadcast %cst : f32 to vector<16x16xf32>
    %10 = arith.subf %4, %9 : vector<16x16xf32>
    %11 = arith.cmpf one, %10, %10 : vector<16x16xf32>
    %12 = vector.broadcast %cst : f32 to vector<16x16xf32>
    %13 = arith.addf %4, %12 : vector<16x16xf32>
    %14 = math.absf %10 : vector<16x16xf32>
    %cst_8 = arith.constant 0.000000e+00 : f32
    %15 = vector.broadcast %cst_8 : f32 to vector<16x16xf32>
    %16 = arith.subf %15, %14 : vector<16x16xf32>
    %17 = math.exp %16 : vector<16x16xf32>
    %18 = math.log1p %17 : vector<16x16xf32>
    %19 = arith.addf %8, %18 : vector<16x16xf32>
    %20 = arith.select %11, %13, %19 : vector<16x16xi1>, vector<16x16xf32>
    %21 = arith.subf %4, %20 : vector<16x16xf32>
    %22 = math.exp %21 : vector<16x16xf32>
    %23 = arith.subf %20, %4 : vector<16x16xf32>
    %cst_9 = arith.constant 1.000000e+02 : f32
    %24 = vector.broadcast %cst_9 : f32 to vector<16x16xf32>
    %25 = arith.minimumf %23, %24 : vector<16x16xf32>
    %26 = arith.mulf %6, %25 : vector<16x16xf32>
    %cst_10 = arith.constant 1.000000e+00 : f32
    %27 = vector.broadcast %cst_10 : f32 to vector<16x16xf32>
    %28 = arith.subf %27, %6 : vector<16x16xf32>
    %cst_11 = arith.constant 1.000000e+02 : f32
    %29 = vector.broadcast %cst_11 : f32 to vector<16x16xf32>
    %30 = arith.minimumf %20, %29 : vector<16x16xf32>
    %31 = arith.mulf %28, %30 : vector<16x16xf32>
    %32 = arith.addf %26, %31 : vector<16x16xf32>
    %c0_12 = arith.constant 0 : index
    %c0_13 = arith.constant 0 : index
    %c0_14 = arith.constant 0 : index
    %33 = vector.load %arg6[%c0_12, %c0_13, %c0_14] : memref<4x8x16xf32, #tpu.memory_space<vmem>>, vector<1x8x16xf32>
    %34 = vector.shape_cast %33 : vector<1x8x16xf32> to vector<8x16xf32>
    %35 = arith.mulf %22, %6 : vector<16x16xf32>
    %36 = vector.shape_cast %35 : vector<16x16xf32> to vector<2x8x16xf32>
    %cst_15 = arith.constant dense<0.000000e+00> : vector<8x16xf32>
    %37 = vector.multi_reduction <add>, %36, %cst_15 [0] : vector<2x8x16xf32> to vector<8x16xf32>
    %38 = arith.addf %34, %37 : vector<8x16xf32>
    %c0_16 = arith.constant 0 : index
    %c0_17 = arith.constant 0 : index
    %c0_18 = arith.constant 0 : index
    %39 = vector.load %arg6[%c0_16, %c0_17, %c0_18] : memref<4x8x16xf32, #tpu.memory_space<vmem>>, vector<1x8x16xf32>
    %40 = vector.shape_cast %39 : vector<1x8x16xf32> to vector<8x16xf32>
    %41 = vector.shape_cast %38 : vector<8x16xf32> to vector<1x8x16xf32>
    tpu.vector_store %arg6[%c0_16, %c0_17, %c0_18], %41 {strides = array<i32>} : memref<4x8x16xf32, #tpu.memory_space<vmem>>, vector<1x8x16xf32>,
    %c1 = arith.constant 1 : index
    %c0_19 = arith.constant 0 : index
    %c0_20 = arith.constant 0 : index
    %42 = vector.load %arg6[%c1, %c0_19, %c0_20] : memref<4x8x16xf32, #tpu.memory_space<vmem>>, vector<1x8x16xf32>
    %43 = vector.shape_cast %42 : vector<1x8x16xf32> to vector<8x16xf32>
    %44 = vector.shape_cast %22 : vector<16x16xf32> to vector<2x8x16xf32>
    %cst_21 = arith.constant dense<0.000000e+00> : vector<8x16xf32>
    %45 = vector.multi_reduction <add>, %44, %cst_21 [0] : vector<2x8x16xf32> to vector<8x16xf32>
    %46 = arith.addf %43, %45 : vector<8x16xf32>
    %c1_22 = arith.constant 1 : index
    %c0_23 = arith.constant 0 : index
    %c0_24 = arith.constant 0 : index
    %47 = vector.load %arg6[%c1_22, %c0_23, %c0_24] : memref<4x8x16xf32, #tpu.memory_space<vmem>>, vector<1x8x16xf32>
    %48 = vector.shape_cast %47 : vector<1x8x16xf32> to vector<8x16xf32>
    %49 = vector.shape_cast %46 : vector<8x16xf32> to vector<1x8x16xf32>
    tpu.vector_store %arg6[%c1_22, %c0_23, %c0_24], %49 {strides = array<i32>} : memref<4x8x16xf32, #tpu.memory_space<vmem>>, vector<1x8x16xf32>,
    %c2 = arith.constant 2 : index
    %c0_25 = arith.constant 0 : index
    %c0_26 = arith.constant 0 : index
    %50 = vector.load %arg6[%c2, %c0_25, %c0_26] : memref<4x8x16xf32, #tpu.memory_space<vmem>>, vector<1x8x16xf32>
    %51 = vector.shape_cast %50 : vector<1x8x16xf32> to vector<8x16xf32>
    %52 = vector.shape_cast %6 : vector<16x16xf32> to vector<2x8x16xf32>
    %cst_27 = arith.constant dense<0.000000e+00> : vector<8x16xf32>
    %53 = vector.multi_reduction <add>, %52, %cst_27 [0] : vector<2x8x16xf32> to vector<8x16xf32>
    %54 = arith.addf %51, %53 : vector<8x16xf32>
    %c2_28 = arith.constant 2 : index
    %c0_29 = arith.constant 0 : index
    %c0_30 = arith.constant 0 : index
    %55 = vector.load %arg6[%c2_28, %c0_29, %c0_30] : memref<4x8x16xf32, #tpu.memory_space<vmem>>, vector<1x8x16xf32>
    %56 = vector.shape_cast %55 : vector<1x8x16xf32> to vector<8x16xf32>
    %57 = vector.shape_cast %54 : vector<8x16xf32> to vector<1x8x16xf32>
    tpu.vector_store %arg6[%c2_28, %c0_29, %c0_30], %57 {strides = array<i32>} : memref<4x8x16xf32, #tpu.memory_space<vmem>>, vector<1x8x16xf32>,
    %c3 = arith.constant 3 : index
    %c0_31 = arith.constant 0 : index
    %c0_32 = arith.constant 0 : index
    %58 = vector.load %arg6[%c3, %c0_31, %c0_32] : memref<4x8x16xf32, #tpu.memory_space<vmem>>, vector<1x8x16xf32>
    %59 = vector.shape_cast %58 : vector<1x8x16xf32> to vector<8x16xf32>
    %60 = vector.shape_cast %32 : vector<16x16xf32> to vector<2x8x16xf32>
    %cst_33 = arith.constant dense<0.000000e+00> : vector<8x16xf32>
    %61 = vector.multi_reduction <add>, %60, %cst_33 [0] : vector<2x8x16xf32> to vector<8x16xf32>
    %62 = arith.addf %59, %61 : vector<8x16xf32>
    %c3_34 = arith.constant 3 : index
    %c0_35 = arith.constant 0 : index
    %c0_36 = arith.constant 0 : index
    %63 = vector.load %arg6[%c3_34, %c0_35, %c0_36] : memref<4x8x16xf32, #tpu.memory_space<vmem>>, vector<1x8x16xf32>
    %64 = vector.shape_cast %63 : vector<1x8x16xf32> to vector<8x16xf32>
    %65 = vector.shape_cast %62 : vector<8x16xf32> to vector<1x8x16xf32>
    tpu.vector_store %arg6[%c3_34, %c0_35, %c0_36], %65 {strides = array<i32>} : memref<4x8x16xf32, #tpu.memory_space<vmem>>, vector<1x8x16xf32>,
    %c0_i32_37 = arith.constant 0 : i32
    %66 = arith.cmpi eq, %arg2, %c0_i32_37 : i32
    %67 = arith.extui %66 : i1 to i32
    %c0_i32_38 = arith.constant 0 : i32
    %68 = arith.cmpi ne, %67, %c0_i32_38 : i32
    scf.if %68 {
      %c0_39 = arith.constant 0 : index
      %c0_40 = arith.constant 0 : index
      %c0_41 = arith.constant 0 : index
      %69 = vector.load %arg6[%c0_39, %c0_40, %c0_41] : memref<4x8x16xf32, #tpu.memory_space<vmem>>, vector<4x8x16xf32>
      %cst_42 = arith.constant dense<0.000000e+00> : vector<4x16xf32>
      %70 = vector.multi_reduction <add>, %69, %cst_42 [1] : vector<4x8x16xf32> to vector<4x16xf32>
      %c0_43 = arith.constant 0 : index
      %c0_44 = arith.constant 0 : index
      %c0_45 = arith.constant 0 : index
      %c0_46 = arith.constant 0 : index
      %71 = vector.load %arg5[%c0_43, %c0_44, %c0_45, %c0_46] : memref<1x1x4x16xf32, #tpu.memory_space<vmem>>, vector<1x1x4x16xf32>
      %72 = vector.shape_cast %71 : vector<1x1x4x16xf32> to vector<4x16xf32>
      %73 = vector.shape_cast %70 : vector<4x16xf32> to vector<1x1x4x16xf32>
      tpu.vector_store %arg5[%c0_43, %c0_44, %c0_45, %c0_46], %73 {strides = array<i32>} : memref<1x1x4x16xf32, #tpu.memory_space<vmem>>, vector<1x1x4x16xf32>,
    } else {
    }
    return
  }
  func.func @transform_0(%arg0: i32, %arg1: i32, %arg2: i32) -> (i32, i32, i32, i32) {
    %c1_i32 = arith.constant 1 : i32
    %0 = arith.addi %arg1, %c1_i32 : i32
    %c0_i32 = arith.constant 0 : i32
    %c0_i32_0 = arith.constant 0 : i32
    return %arg0, %0, %arg2, %c0_i32 : i32, i32, i32, i32
  }
  func.func @transform_1(%arg0: i32, %arg1: i32, %arg2: i32) -> (i32, i32, i32, i32) {
    %c1_i32 = arith.constant 1 : i32
    %0 = arith.addi %arg1, %c1_i32 : i32
    %c0_i32 = arith.constant 0 : i32
    %c0_i32_0 = arith.constant 0 : i32
    return %arg0, %0, %arg2, %c0_i32 : i32, i32, i32, i32
  }
  func.func @transform_2(%arg0: i32, %arg1: i32, %arg2: i32) -> (i32, i32, i32, i32) {
    %c0_i32 = arith.constant 0 : i32
    %c0_i32_0 = arith.constant 0 : i32
    %c0_i32_1 = arith.constant 0 : i32
    return %arg0, %arg1, %c0_i32, %c0_i32_0 : i32, i32, i32, i32
  }
}

</mosaic_0001>

<bundles_post_ra>
// kernel: tpu_custom_call.1
= control target key start
LH: loop header
LB: loop body
LE: loop exit
PB: predicated region body
PF: predicated region fallthrough
CT: control target
= control target key end

     0   :  { %7 = vsyncpa [#allocation4], 0  ;;  %s976_s0 = inlined_call_operand.hbm [shape: f32[2,2,16,16], index: 0, kind: input, shape index: {}]   ;;  %s977_s1 = inlined_call_operand.hbm [shape: f32[2,2,16,16], index: 1, kind: input, shape index: {}]   ;;  %s978_s2 = inlined_call_operand.hbm [shape: f32[2,1,4,16], index: 2, kind: output, shape index: {}]  }
   0x1   :  { %9 = vsyncpa [#allocation4 + $0x1], 0 }
   0x2   :  { %10 = vsyncpa [#allocation7], 0 }
   0x3   :  { %12 = vsyncpa [#allocation7 + $0x1], 0 }
   0x4   :  { %13 = vsyncpa [#allocation5], 0 }
   0x5   :  { %15 = vsyncpa [#allocation5 + $0x1], 0  ;;  %s802_s9 = smov 0   ;;  %s804_s10 = smov 0  }
   0x6   :  { %s806_s11 = smov 0   ;;  %s808_s12 = smov 0  }
   0x7   :  { %s810_s13 = smov 0   ;;  %s812_s14 = smov 0  }
   0x8 LB: > { %s534_s15 = sadd.s32 4294967295, %s782_s14   ;;  %s535_s16 = sadd.s32 4294967294, %s782_s14   ;;  %s782_s14 = sphi %s812_s14, %s21_s14   ;;  %s778_s13 = sphi %s810_s13, %s988_s13   ;;  %s774_s12 = sphi %s808_s12, %s987_s12   ;;  %s770_s11 = sphi %s806_s11, %s986_s11   ;;  %s766_s10 = sphi %s804_s10, %s985_s10   ;;  %s762_s9 = sphi %s802_s9, %s984_s9  }
   0x9   : > { %s40_s17 = sadd.s32 1, %s778_s13  ;;  %s53_s18 = sadd.s32 1, %s770_s11 }
   0xa   : > { %p42_p0 = scmp.ge.s32.totalorder %s40_s17, 2  ;;  %p60_p1 = scmp.ne.s32.totalorder %s770_s11, %s766_s10 }
   0xb   : > { %p61_p2 = scmp.eq.s32.totalorder %s782_s14, 0  ;;  %p66_p3 = scmp.ne.s32.totalorder %s766_s10, %s762_s9 }
   0xc   : > { %s990_s17 = smov (%p42_p0, %s40_s17), 0  ;;  %p67_p5 = scmp.eq.s32.totalorder %s534_s15, 0 }
   0xd   : > { %p843_p4 = por %p61_p2, %p60_p1  ;;  %s46_s20 = ssub.s32 %s778_s13, %s990_s17 }
   0xe   : > { %p124_p6 = scmp.eq.s32.totalorder %s534_s15, 1  ;;  %p51_p7 = scmp.eq.s32.totalorder %s46_s20, 0 }
   0xf   : > { %p849_p8 = por %p67_p5, %p66_p3  ;;  %p130_p10 = scmp.eq.s32.totalorder %s535_s16, 1 }
  0x10   : > { %p853_p9 = por %p124_p6, %p60_p1  ;;  %p537_p12 = scmp.ge.s32.totalorder %s782_s14, 2 }
  0x11   : > { %s858_s23 = scalar_select %p51_p7, %s770_s11, %s53_s18  }
  0x12   : > { %p860_p11 = por %p130_p10, %p66_p3  ;;  %p571_p13 = scmp.lt.s32.totalorder %s782_s14, 2 }
  0x13   : > { %s867_s25 = sand.u32 1, %s770_s11   ;;  %s552_s27 = sshll.u32 %s778_s13, 5 }
  0x14   : > { %s538_s26 = sshll.u32 %s867_s25, 4  ;;  %s453_s30 = scalar_lea.hbm %s976_s0, %s552_s27 }
  0x15   : > { %s154_s3 = scalar_lea.vmem [#allocation3], %s538_s26  ;;  %s454_s5 = scalar_lea.hbm %s453_s30, 16 }
  0x16   : > { %s167_s4 = sshll.u32 %s154_s3, 4  ;;  %s165_s6 = sshll.u32 %s454_s5, 4  ;;  %s168_s4 = int_to_ptr.vmem [resolvable:$true] %s167_s4  ;;  %s166_s6 = int_to_ptr.hbm [resolvable:$true] %s165_s6 }
  0x17   : > { %p876_p0 = pnand %p571_p13, %p843_p4  ;;  %s151_s8 = scalar_lea.sflag [#allocation4], %s867_s25 }
  0x18   : > { %s784_s15 = smov 128   ;;  %s785_s16 = smov 8  }
  0x19   : > { %563 = dma.hbm_to_vmem [thread:$0]  (!%p876_p0), %s166_s6, 256, %s168_s4, %s151_s8, %s784_s15, %s784_s15, %s785_s16  }
  0x1a   : > { %p544_p1 = scmp.ge.s32.totalorder %s782_s14, 1  ;;  %p202_p2 = scmp.lt.s32.totalorder %s782_s14, 3 }
  0x1b   : > { %s464_s19 = scalar_lea.hbm %s977_s1, %s552_s27  ;;  %s181_s29 = scalar_lea.vmem [#allocation6], %s538_s26 }
  0x1c   : > { %p203_p3 = pnand %p544_p1, %p202_p2  ;;  %s465_s28 = scalar_lea.hbm %s464_s19, 16 }
  0x1d   : > { %s194_s30 = sshll.u32 %s181_s29, 4  ;;  %s192_s3 = sshll.u32 %s465_s28, 4  ;;  %s195_s30 = int_to_ptr.vmem [resolvable:$true] %s194_s30  ;;  %s193_s3 = int_to_ptr.hbm [resolvable:$true] %s192_s3 }
  0x1e   : > { %s178_s5 = scalar_lea.sflag [#allocation7], %s867_s25  ;;  %206 = sbr.rel (%p203_p3) target bundleno = 114 (0x72), region = 28 }
  0x1f   : > { %566 = dma.hbm_to_vmem [thread:$0]  (!%p876_p0), %s193_s3, 256, %s195_s30, %s178_s5, %s784_s15, %s784_s15, %s785_s16  }
  0x20   : > { %s892_s4 = sand.u32 (!%p203_p3), 1, %s766_s10  }
  0x21   : > { %s545_s6 = sshll.u32 (!%p203_p3), %s892_s4, 4  ;;  %s209_s8 = scalar_lea.sflag (!%p203_p3), [#allocation4], %s892_s4 }
  0x22   : > { %s212_s18 = scalar_lea.vmem (!%p203_p3), [#allocation3], %s545_s6 }
  0x23   : > { %749 = dma.done.wait (%p849_p8), %s209_s8, 256  }
  0x24   : > { %751 = vsyncadd (%p849_p8), %s209_s8, 4294967040  ;;  %s219_s25 = scalar_lea.sflag [#allocation7], %s892_s4  ;;  %s222_s26 = scalar_lea.vmem [#allocation6], %s545_s6 }
  0x25   : > { %753 = dma.done.wait (%p849_p8), %s219_s25, 256  }
  0x26   : > { %755 = vsyncadd (%p849_p8), %s219_s25, 4294967040  ;;  %vm257_vm0 = vcmask 130048   ;;  %v786_v0 = vmov 0.0   ;;  %v909_v1 = vld [vmem:[%s222_s26] sm:$0xff]  ;;  %v911_v2 = vld [vmem:[%s222_s26 + $0x8] sm:$0xff]  ;;  %s547_s21 = sshll.u32 %s892_s4, 2 }
  0x27   : > { %260 = vst.msk [vmem:[#allocation2 + $0x10] sm:$0xff] %vm257_vm0, %v786_v0  ;;  %v262_v3 = vld [vmem:[%s212_s18] sm:$0xff]  ;;  %v340_v5 = vsel %vm257_vm0, %v909_v1, 0.0  ;;  %v341_v6 = vsel %vm257_vm0, %v911_v2, 0.0  ;;  %v263_v7 = vld [vmem:[%s212_s18 + $0x8] sm:$0xff]  ;;  %v314_v38 = vsub.f32 1.0, %v909_v1 }
  0x28   : > { %258 = vst.msk [vmem:[#allocation2] sm:$0xff] %vm257_vm0, %v786_v0  ;;  %v342_v8 = vadd.f32 %v341_v6, %v340_v5  ;;  %v272_v9 = vand.u32 2147483647, %v262_v3  ;;  %v273_v10 = vand.u32 2147483647, %v263_v7  ;;  %v266_v28 = vmax.f32 %v262_v3, 0.0 }
  0x29   : > { %259 = vst.msk [vmem:[#allocation2 + $0x8] sm:$0xff] %vm257_vm0, %v786_v0  ;;  %v267_v31 = vmax.f32 %v263_v7, 0.0  ;;  %vm268_vm3 = vcmp.ne.f32.partialorder %v262_v3, %v262_v3  ;;  %vm269_vm4 = vcmp.ne.f32.partialorder %v263_v7, %v263_v7  ;;  %v315_v40 = vsub.f32 1.0, %v911_v2  ;;  %s549_s27 = sshll.u32 %s774_s12, 2  ;;  %s248_s20 = scalar_lea.vmem [#allocation8], %s547_s21 }
  0x2a   : > { %261 = vst.msk [vmem:[#allocation2 + $0x18] sm:$0xff] %vm257_vm0, %v786_v0  ;;  %v274_v12 = vsub.f32 0.0, %v272_v9  ;;  %v275_v13 = vsub.f32 0.0, %v273_v10  ;;  %s412_s16 = scalar_lea.hbm %s978_s2, %s549_s27  ;;  %vm391_vm5 = vcmask 1041409   ;;  %vm393_vm6 = vcmask 1042434   ;;  %s414_s19 = sshll.u32 %s248_s20, 4  ;;  %s415_s19 = int_to_ptr.vmem [resolvable:$true] %s414_s19 }
  0x2b   : > { %s416_s28 = sshll.u32 %s412_s16, 4  ;;  %vm395_vm7 = vcmask 1043459   ;;  %vm398_vm8 = vcmask 125952   ;;  %s401_s12 = scalar_lea.sflag [#allocation5], %s892_s4  ;;  %s417_s28 = int_to_ptr.hbm [resolvable:$true] %s416_s28 }
  0x2c   : > { %v276_v14 = vmul.f32 1.442695, %v274_v12  ;;  %v278_v15 = vmul.f32 1.442695, %v275_v13  ;;  %s710_s29 = sshra.s32 %s417_s28, 4  ;;  %s716_s6 = scalar_lea.hbm %s978_s2, 8  ;;  %s711_s29 = int_to_ptr.hbm [resolvable:$true] %s710_s29 }
  0x2d   : > { %s712_s30 = scalar_lea.hbm %s711_s29, 4  ;;  %p717_p7 = scmp.lt.s32.totalorder %s711_s29, %s978_s2 }
  0x2e   : > { %v339_v4 = vld [vmem:[#allocation2 + $0x10] sm:$0xff]  ;;  %624 = vpow2.f32 %v276_v14  ;;  %p713_p4 = scmp.ne.s32.totalorder %s711_s29, %s712_s30  ;;  %p718_p8 = scmp.lt.s32.totalorder %s716_s6, %s712_s30 }
  0x2f   : > { %v343_v11 = vadd.f32 %v342_v8, %v339_v4  ;;  %626 = vpow2.f32 %v278_v15 }
  0x30   : > { %v332_v5 = vld [vmem:[#allocation2 + $0x8] sm:$0xff]  ;;  %p714_p5 = pnand %p713_p4, %p853_p9  ;;  %p719_p10 = por %p718_p8, %p717_p7 }
  0x31   : > { %344 = vst.msk [vmem:[#allocation2 + $0x10] sm:$0xff] %vm257_vm0, %v343_v11  ;;  %v346_v59 = vld [vmem:[#allocation2 + $0x18] sm:$0xff]  ;;  %v322_v11 = vld [vmem:[#allocation2] sm:$0xff] }
  0x32   : > { %p715_p6 = pneg %p714_p5 }
  0x34   : > { %v625_v16 = vpop.eup %624  ;;  %p720_p13 = pnand %p719_p10, %p715_p6 }
  0x35   : > { %v627_v17 = vpop.eup %626  ;;  %v280_v18 = vadd.f32 1.0, %v625_v16  ;;  %v283_v19 = vmul.f32 -0.5, %v625_v16  ;;  %v286_v23 = vand.u32 2147483647, %v625_v16 }
  0x36   : > { %v289_v20 = vadd.f32 1.0, %v627_v17  ;;  %v292_v21 = vmul.f32 -0.5, %v627_v17  ;;  %v295_v25 = vand.u32 2147483647, %v627_v17 }
  0x37   : > { %628 = vlog2.f32 %v280_v18  ;;  %v284_v22 = vadd.f32 1.0, %v283_v19  ;;  %vm287_vm1 = vcmp.lt.f32.partialorder %v286_v23, 0.0004427343 }
  0x38   : > { %630 = vlog2.f32 %v289_v20  ;;  %v293_v24 = vadd.f32 1.0, %v292_v21  ;;  %vm296_vm2 = vcmp.lt.f32.partialorder %v295_v25, 0.0004427343  ;;  %v357_v10 = vld [vmem:[#allocation2 + $0x10] sm:$0xff] }
  0x39   : > { %v285_v26 = vmul.f32 %v625_v16, %v284_v22  ;;  %v373_v15 = vsel %vm257_vm0, %v357_v10, 0.0 }
  0x3a   : > { %v294_v29 = vmul.f32 %v627_v17, %v293_v24  ;;  %v374_v16 = vrot.slane %v373_v15, 4 }
  0x3c   : > { %v375_v18 = vadd.f32 %v374_v16, %v373_v15 }
  0x3d   : > { %v629_v27 = vpop.eup %628 }
  0x3e   : > { %v631_v30 = vpop.eup %630  ;;  %v282_v32 = vmul.f32 0.6931472, %v629_v27 }
  0x3f   : > { %v291_v33 = vmul.f32 0.6931472, %v631_v30 }
  0x40   : > { %v288_v34 = vsel %vm287_vm1, %v285_v26, %v282_v32  ;;  %v376_v26 = vrot.slane %v375_v18, 2 }
  0x41   : > { %v297_v35 = vsel %vm296_vm2, %v294_v29, %v291_v33  ;;  %v298_v36 = vadd.f32 %v288_v34, %v266_v28 }
  0x42   : > { %v299_v37 = vadd.f32 %v297_v35, %v267_v31  ;;  %v377_v32 = vadd.f32 %v376_v26, %v375_v18 }
  0x43   : > { %v300_v39 = vsel %vm268_vm3, %v262_v3, %v298_v36 }
  0x44   : > { %v301_v41 = vsel %vm269_vm4, %v263_v7, %v299_v37  ;;  %v308_v42 = vsub.f32 %v300_v39, %v262_v3  ;;  %v316_v43 = vmin.f32 %v300_v39, 100.0  ;;  %v302_v44 = vsub.f32 %v262_v3, %v300_v39 }
  0x45   : > { %v309_v45 = vsub.f32 %v301_v41, %v263_v7  ;;  %v317_v46 = vmin.f32 %v301_v41, 100.0  ;;  %v303_v47 = vsub.f32 %v263_v7, %v301_v41 }
  0x46   : > { %v310_v48 = vmin.f32 %v308_v42, 100.0  ;;  %v318_v49 = vmul.f32 %v316_v43, %v314_v38  ;;  %v304_v50 = vmul.f32 1.442695, %v302_v44  ;;  %v378_v38 = vrot.slane %v377_v32, 1 }
  0x47   : > { %v311_v51 = vmin.f32 %v309_v45, 100.0  ;;  %v319_v52 = vmul.f32 %v317_v46, %v315_v40  ;;  %v306_v53 = vmul.f32 1.442695, %v303_v47 }
  0x48   : > { %v312_v54 = vmul.f32 %v310_v48, %v909_v1  ;;  %632 = vpow2.f32 %v304_v50  ;;  %v379_v43 = vadd.f32 %v378_v38, %v377_v32 }
  0x49   : > { %v313_v55 = vmul.f32 %v311_v51, %v911_v2  ;;  %634 = vpow2.f32 %v306_v53 }
  0x4a   : > { %v320_v56 = vadd.f32 %v318_v49, %v312_v54 }
  0x4b   : > { %v321_v57 = vadd.f32 %v319_v52, %v313_v55 }
  0x4c   : > { %v347_v58 = vsel %vm257_vm0, %v320_v56, 0.0 }
  0x4d   : > { %v348_v60 = vsel %vm257_vm0, %v321_v57, 0.0 }
  0x4e   : > { %v633_v61 = vpop.eup %632  ;;  %v349_v62 = vadd.f32 %v348_v60, %v347_v58 }
  0x4f   : > { %v635_v63 = vpop.eup %634  ;;  %v333_v0 = vsel %vm257_vm0, %v633_v61, 0.0  ;;  %v323_v3 = vmul.f32 %v633_v61, %v909_v1 }
  0x50   : > { %v350_v4 = vadd.f32 %v349_v62, %v346_v59  ;;  %v334_v6 = vsel %vm257_vm0, %v635_v63, 0.0  ;;  %v324_v7 = vmul.f32 %v635_v63, %v911_v2 }
  0x51   : > { %v335_v8 = vadd.f32 %v334_v6, %v333_v0  ;;  %v326_v9 = vsel %vm257_vm0, %v323_v3, 0.0 }
  0x52   : > { %351 = vst.msk [vmem:[#allocation2 + $0x18] sm:$0xff] %vm257_vm0, %v350_v4  ;;  %v327_v12 = vsel %vm257_vm0, %v324_v7, 0.0 }
  0x53   : > { %v336_v13 = vadd.f32 %v335_v8, %v332_v5  ;;  %v328_v14 = vadd.f32 %v327_v12, %v326_v9 }
  0x55   : > { %337 = vst.msk [vmem:[#allocation2 + $0x8] sm:$0xff] %vm257_vm0, %v336_v13  ;;  %v329_v1 = vadd.f32 %v328_v14, %v322_v11 }
  0x57   : > { %330 = vst.msk [vmem:[#allocation2] sm:$0xff] %vm257_vm0, %v329_v1 }
  0x59   : > { %v358_v2 = vld [vmem:[#allocation2 + $0x18] sm:$0xff] }
  0x5a   : > { %v380_v17 = vsel %vm257_vm0, %v358_v2, 0.0 }
  0x5b   : > { %v381_v19 = vrot.slane %v380_v17, 4 }
  0x5c   : > { %v356_v20 = vld [vmem:[#allocation2 + $0x8] sm:$0xff] }
  0x5d   : > { %v366_v21 = vsel %vm257_vm0, %v356_v20, 0.0  ;;  %v382_v22 = vadd.f32 %v381_v19, %v380_v17 }
  0x5e   : > { %v355_v23 = vld [vmem:[#allocation2] sm:$0xff]  ;;  %v367_v24 = vrot.slane %v366_v21, 4 }
  0x5f   : > { %v359_v25 = vsel %vm257_vm0, %v355_v23, 0.0  ;;  %v383_v29 = vrot.slane %v382_v22, 2 }
  0x60   : > { %v360_v27 = vrot.slane %v359_v25, 4  ;;  %v368_v28 = vadd.f32 %v367_v24, %v366_v21 }
  0x61   : > { %v384_v35 = vadd.f32 %v383_v29, %v382_v22 }
  0x62   : > { %v361_v30 = vadd.f32 %v360_v27, %v359_v25  ;;  %v369_v31 = vrot.slane %v368_v28, 2 }
  0x63   : > { %v385_v40 = vrot.slane %v384_v35, 1 }
  0x64   : > { %v362_v33 = vrot.slane %v361_v30, 2  ;;  %v370_v34 = vadd.f32 %v369_v31, %v368_v28 }
  0x65   : > { %v386_v44 = vadd.f32 %v385_v40, %v384_v35 }
  0x66   : > { %v363_v36 = vadd.f32 %v362_v33, %v361_v30  ;;  %v371_v37 = vrot.slane %v370_v34, 1 }
  0x68   : > { %v364_v39 = vrot.slane %v363_v36, 1  ;;  %v372_v42 = vadd.f32 %v371_v37, %v370_v34 }
  0x6a   : > { %v365_v41 = vadd.f32 %v364_v39, %v363_v36 }
  0x6c   : > { %v392_v45 = vsel %vm391_vm5, %v372_v42, %v365_v41 }
  0x6d   : > { %v394_v46 = vsel %vm393_vm6, %v379_v43, %v392_v45 }
  0x6e   : > { %v396_v47 = vsel %vm395_vm7, %v386_v44, %v394_v46 }
  0x6f   : > { %399 = vst.msk [vmem:[%s248_s20] sm:$0xf] %vm398_vm8, %v396_v47 }
  0x70   : > { %723 = shalt.err (!%p720_p13)
}
  0x71   : > { %558 = dma.vmem_to_hbm [thread:$0]  (%p853_p9), %s415_s19, 64, %s417_s28, %s401_s12  }
  0x72 PF: > { %s428_s4 = sand.u32 1, %s762_s9   ;;  %p568_p0 = pnand %p537_p12, %p860_p11 }
  0x73   : > { %s429_s25 = scalar_lea.sflag [#allocation5], %s428_s4 }
  0x74   : > { %p569_p1 = pneg %p568_p0 }
  0x76   : > { %757 = dma.done.wait (%p569_p1), %s429_s25, 64  }
  0x77   : > { %759 = vsyncadd (%p569_p1), %s429_s25, 4294967232  ;;  %s21_s14 = sadd.s32 1, %s782_s14   ;;  %s984_s9 = smov %s766_s10 }
  0x78   : > { %p18_p2 = scmp.ge.s32.totalorder %s21_s14, 4   ;;  %s985_s10 = smov %s770_s11 }
  0x79   : > { %s986_s11 = smov %s858_s23  ;;  %s987_s12 = smov %s778_s13 }
  0x7a   : > { %s988_s13 = smov %s990_s17  ;;  %20 = sbr.rel (!%p18_p2) target bundleno = 8 (0x8), region = 97 }
  0x7f   :  { %435 = vsyncpa [#allocation4], 1 }
  0x80   :  { %437 = vsyncpa [#allocation4 + $0x1], 1 }
  0x81   :  { %438 = vsyncpa [#allocation7], 1 }
  0x82   :  { %440 = vsyncpa [#allocation7 + $0x1], 1 }
  0x83   :  { %441 = vsyncpa [#allocation5], 1 }
  0x84   :  { %443 = vsyncpa [#allocation5 + $0x1], 1 }

</bundles_post_ra>
